<compile_context>
chip_gen: v6e
topology: v6e:2x2x1
jax: 0.10.0
libtpu: 0.0.40
codegen_flags: <defaults>
</compile_context>

<pallas_src>
import jax
import jax.numpy as jnp
from jax.experimental import pallas as pl
from jax.experimental.pallas import tpu as pltpu


def _final_layer_kernel(sm_ref, x_ref, w_ref, b_ref, o_ref):
    # sm_ref: (1, 2, D)  -> row 0 = shift, row 1 = (1 + scale)
    # x_ref : (1, tT, D)
    # w_ref : (O, D)  (= W_lin^T, model dtype)
    # b_ref : (O, 1)  (f32)
    # o_ref : (1, O, tT)   (transposed, lane-dense output)
    x = x_ref[0].astype(jnp.float32)                       # (tT, D)
    sm = sm_ref[0].astype(jnp.float32)                     # (2, D)
    shift = sm[0:1, :]                                     # (1, D)
    scale1 = sm[1:2, :]                                    # (1, D) == 1 + scale

    # LayerNorm (no affine, eps=1e-6): single read of x for both moments.
    inv_d = 1.0 / x.shape[-1]
    mean = jnp.sum(x, axis=-1, keepdims=True) * inv_d      # (tT, 1)
    ex2 = jnp.sum(x * x, axis=-1, keepdims=True) * inv_d   # (tT, 1)
    var = ex2 - mean * mean
    rstd = jax.lax.rsqrt(var + 1e-6)                       # (tT, 1)

    # Fused normalize + modulate: (x - mean) * (rstd * (1+scale)) + shift.
    xm = (x - mean) * (rstd * scale1) + shift              # (tT, D)

    # Final linear, computed transposed so the output block is lane-dense:
    #   (O, D) contracted with (tT, D) over D  ->  (O, tT)
    # MXU operands in the weight's (model) dtype, f32 accumulation.
    w = w_ref[...]
    y = jax.lax.dot_general(
        w, xm.astype(w.dtype),
        dimension_numbers=(((1,), (1,)), ((), ())),
        preferred_element_type=jnp.float32)
    y = y + b_ref[...].astype(jnp.float32)                 # (O, 1) bcast over lanes
    o_ref[0] = y.astype(o_ref.dtype)


def _vmem_per_step(tT, D, O, x_bytes, w_bytes, out_bytes):
    return (2 * tT * D * x_bytes        # x tile, double-buffered
            + 4 * tT * D * 4            # f32 LN/modulate intermediates
            + 2 * O * tT * out_bytes    # out tile, double-buffered
            + 2 * O * D * w_bytes       # resident weight (double-buffered)
            + 2 * (2 * D + O) * 4)      # shift/(1+scale) + bias


def _pick_token_tile(T_pad, N, D, O, x_bytes, w_bytes, out_bytes,
                     budget=24 << 20):
    # T_pad is always a multiple of 128, so 128 always divides it.
    cands = [t for t in (1024, 512, 256, 128) if T_pad % t == 0]
    fitting = [t for t in cands
               if _vmem_per_step(t, D, O, x_bytes, w_bytes, out_bytes) <= budget]
    if not fitting:
        fitting = [128]
    for t in fitting:                       # largest first
        if N * (T_pad // t) >= 2:           # keep both v7x TCs busy
            return t
    return fitting[-1]


def final_layer_pallas(x, c, w_ada, b_ada, w_lin, b_lin,
                       patch_size, out_channels, out_dtype=None):
    """x: (N, T, D), c: (N, D); weights stored as (in, out) = torch W.T.

    Returns imgs (N, C, h*p, w*p) (same as FinalLayer.forward + unpatchify).
    """
    N, T, D = x.shape
    O = patch_size * patch_size * out_channels
    out_dtype = x.dtype if out_dtype is None else out_dtype

    # adaLN modulation hoisted out of the kernel: one batched (N,D)x(D,2D)
    # matmul amortized over the whole batch.
    cf = c.astype(jnp.float32)
    mod = (cf * jax.nn.sigmoid(cf)) @ w_ada.astype(jnp.float32) \
        + b_ada.astype(jnp.float32)[None, :]
    shift = mod[:, :D]
    scale1 = 1.0 + mod[:, D:]                       # (1 + scale) precomputed
    sm = jnp.stack([shift, scale1], axis=1)         # (N, 2, D)

    # Lane-/VMEM-friendly weight layout; keep model dtype for the MXU.
    w_t = jnp.transpose(w_lin)                      # (O, D)
    b_col = b_lin.astype(jnp.float32).reshape(O, 1) # (O, 1)

    # Pad tokens to a multiple of 128 so the output lane dim is always dense.
    T_pad = ((T + 127) // 128) * 128
    x_p = x if T_pad == T else jnp.pad(x, ((0, 0), (0, T_pad - T), (0, 0)))

    x_bytes = jnp.dtype(x.dtype).itemsize
    w_bytes = jnp.dtype(w_t.dtype).itemsize
    out_bytes = jnp.dtype(out_dtype).itemsize
    tT = _pick_token_tile(T_pad, N, D, O, x_bytes, w_bytes, out_bytes)

    vmem_est = _vmem_per_step(tT, D, O, x_bytes, w_bytes, out_bytes)
    vmem_limit = int(min(max(2 * vmem_est, 16 << 20), 64 << 20))

    cost = pl.CostEstimate(
        flops=int(2 * N * T_pad * D * O + 8 * N * T_pad * D),
        transcendentals=int(N * T_pad),
        bytes_accessed=int(N * T_pad * D * x_bytes
                           + N * O * T_pad * out_bytes
                           + O * D * w_bytes
                           + N * 2 * D * 4 + O * 4),
    )

    grid_spec = pltpu.PrefetchScalarGridSpec(
        num_scalar_prefetch=0,
        grid=(N, T_pad // tT),
        in_specs=[
            pl.BlockSpec((1, 2, D), lambda n, t: (n, 0, 0)),     # shift / 1+scale
            pl.BlockSpec((1, tT, D), lambda n, t: (n, t, 0)),    # x tile
            pl.BlockSpec((O, D), lambda n, t: (0, 0)),           # W_lin^T (resident)
            pl.BlockSpec((O, 1), lambda n, t: (0, 0)),           # b_lin (resident)
        ],
        out_specs=pl.BlockSpec((1, O, tT), lambda n, t: (n, 0, t)),
    )

    y = pl.pallas_call(
        _final_layer_kernel,
        out_shape=jax.ShapeDtypeStruct((N, O, T_pad), out_dtype),
        grid_spec=grid_spec,
        compiler_params=pltpu.CompilerParams(
            dimension_semantics=("parallel", "parallel"),
            vmem_limit_bytes=vmem_limit),
        cost_estimate=cost,
    )(sm, x_p, w_t, b_col)                          # (N, O, T_pad)

    y = y[:, :, :T]                                 # drop token padding

    # unpatchify (pure layout glue).  Kernel emitted (N, O, T); the transpose
    # back to token-major is absorbed into the einsum below.
    p, C = patch_size, out_channels
    h = w = int(round(T ** 0.5))
    assert h * w == T
    y = y.reshape(N, p, p, C, h, w)
    y = jnp.einsum('npqchw->nchpwq', y)
    return y.reshape(N, C, h * p, w * p)


def _reference(x, c, w_ada, b_ada, w_lin, b_lin, patch_size, out_channels):
    silu_c = c * jax.nn.sigmoid(c)
    mod = silu_c @ w_ada + b_ada.reshape(1, -1)
    D = x.shape[-1]
    shift, scale = mod[:, :D], mod[:, D:]
    mean = jnp.mean(x, axis=-1, keepdims=True)
    var = jnp.mean((x - mean) ** 2, axis=-1, keepdims=True)
    xn = (x - mean) / jnp.sqrt(var + 1e-6)
    xm = xn * (1.0 + scale[:, None, :]) + shift[:, None, :]
    y = xm @ w_lin + b_lin.reshape(1, 1, -1)
    N, T, _ = x.shape
    p, C = patch_size, out_channels
    h = w = int(round(T ** 0.5))
    y = y.reshape(N, h, w, p, p, C)
    y = jnp.einsum('nhwpqc->nchpwq', y)
    return y.reshape(N, C, h * p, w * p)


if __name__ == "__main__":
    # Small, module-consistent shapes: 4x4 grid of 2x2 patches, hidden 32.
    N, T, D = 2, 16, 32
    patch_size, out_channels = 2, 4
    O = patch_size * patch_size * out_channels

    key = jax.random.PRNGKey(0)
    kx, kc, k1, k2, k3, k4 = jax.random.split(key, 6)

    x = jax.random.normal(kx, (N, T, D), dtype=jnp.float32)
    c = jax.random.normal(kc, (N, D), dtype=jnp.float32)

    # Parameters stored as (in, out) == W.T of the torch Linear layers.
    w_ada = jax.random.normal(k1, (D, 2 * D), dtype=jnp.float32) * 0.02
    b_ada = jax.random.normal(k2, (2 * D,), dtype=jnp.float32) * 0.02
    w_lin = jax.random.normal(k3, (D, O), dtype=jnp.float32) * 0.02
    b_lin = jax.random.normal(k4, (O,), dtype=jnp.float32) * 0.02

    out = final_layer_pallas(x, c, w_ada, b_ada, w_lin, b_lin,
                             patch_size, out_channels)
    out = jax.block_until_ready(out)

    ref = _reference(x, c, w_ada, b_ada, w_lin, b_lin,
                     patch_size, out_channels)
    side = patch_size * int(T ** 0.5)
    assert out.shape == (N, out_channels, side, side)
    assert jnp.allclose(out, ref, atol=2e-4, rtol=2e-4), \
        float(jnp.max(jnp.abs(out - ref)))
    print("KERNEL_OK")
</pallas_src>

<mosaic_0001>
module attributes {stable_mosaic.version = 11 : i64} {
  func.func @_final_layer_kernel(%arg0: i32, %arg1: i32, %arg2: memref<1x2x32xf32, #tpu.memory_space<vmem>>, %arg3: memref<1x128x32xf32, #tpu.memory_space<vmem>>, %arg4: memref<16x32xf32, #tpu.memory_space<vmem>>, %arg5: memref<16x1xf32, #tpu.memory_space<vmem>>, %arg6: memref<1x16x128xf32, #tpu.memory_space<vmem>>) attributes {dimension_semantics = [#tpu.dimension_semantics<parallel>, #tpu.dimension_semantics<parallel>], iteration_bounds = array<i64: 2, 1>, scalar_prefetch = 0 : i64, scratch_operands = 0 : i64, tpu.core_type = #tpu.core_type<tc>, window_params = [{transform_indices = @transform_0, window_bounds = array<i64: 1, 2, 32>}, {transform_indices = @transform_1, window_bounds = array<i64: 1, 128, 32>}, {pipeline_mode = #tpu.pipeline_mode<synchronous>, transform_indices = @transform_2, window_bounds = array<i64: 16, 32>}, {pipeline_mode = #tpu.pipeline_mode<synchronous>, transform_indices = @transform_3, window_bounds = array<i64: 16, 1>}, {transform_indices = @transform_4, window_bounds = array<i64: 1, 16, 128>}]} {
    %c0 = arith.constant 0 : index
    %c0_0 = arith.constant 0 : index
    %c0_1 = arith.constant 0 : index
    %0 = vector.load %arg3[%c0, %c0_0, %c0_1] : memref<1x128x32xf32, #tpu.memory_space<vmem>>, vector<1x128x32xf32>
    %1 = vector.shape_cast %0 : vector<1x128x32xf32> to vector<128x32xf32>
    %c0_2 = arith.constant 0 : index
    %c0_3 = arith.constant 0 : index
    %c0_4 = arith.constant 0 : index
    %2 = vector.load %arg2[%c0_2, %c0_3, %c0_4] : memref<1x2x32xf32, #tpu.memory_space<vmem>>, vector<1x2x32xf32>
    %3 = vector.shape_cast %2 : vector<1x2x32xf32> to vector<2x32xf32>
    %4 = vector.extract_strided_slice %3 {offsets = [0, 0], sizes = [1, 32], strides = [1, 1]} : vector<2x32xf32> to vector<1x32xf32>
    %5 = vector.extract_strided_slice %3 {offsets = [1, 0], sizes = [1, 32], strides = [1, 1]} : vector<2x32xf32> to vector<1x32xf32>
    %cst = arith.constant dense<0.000000e+00> : vector<128xf32>
    %6 = vector.multi_reduction <add>, %1, %cst [1] : vector<128x32xf32> to vector<128xf32>
    %7 = vector.shape_cast %6 : vector<128xf32> to vector<128x1xf32>
    %cst_5 = arith.constant 3.125000e-02 : f32
    %8 = vector.broadcast %cst_5 : f32 to vector<128x1xf32>
    %9 = arith.mulf %7, %8 : vector<128x1xf32>
    %10 = arith.mulf %1, %1 : vector<128x32xf32>
    %cst_6 = arith.constant dense<0.000000e+00> : vector<128xf32>
    %11 = vector.multi_reduction <add>, %10, %cst_6 [1] : vector<128x32xf32> to vector<128xf32>
    %12 = vector.shape_cast %11 : vector<128xf32> to vector<128x1xf32>
    %cst_7 = arith.constant 3.125000e-02 : f32
    %13 = vector.broadcast %cst_7 : f32 to vector<128x1xf32>
    %14 = arith.mulf %12, %13 : vector<128x1xf32>
    %15 = arith.mulf %9, %9 : vector<128x1xf32>
    %16 = arith.subf %14, %15 : vector<128x1xf32>
    %cst_8 = arith.constant 9.99999997E-7 : f32
    %17 = vector.broadcast %cst_8 : f32 to vector<128x1xf32>
    %18 = arith.addf %16, %17 : vector<128x1xf32>
    %19 = math.rsqrt %18 : vector<128x1xf32>
    %20 = vector.broadcast %9 : vector<128x1xf32> to vector<128x32xf32>
    %21 = arith.subf %1, %20 : vector<128x32xf32>
    %22 = vector.broadcast %19 : vector<128x1xf32> to vector<128x32xf32>
    %23 = vector.broadcast %5 : vector<1x32xf32> to vector<128x32xf32>
    %24 = arith.mulf %22, %23 : vector<128x32xf32>
    %25 = arith.mulf %21, %24 : vector<128x32xf32>
    %26 = vector.broadcast %4 : vector<1x32xf32> to vector<128x32xf32>
    %27 = arith.addf %25, %26 : vector<128x32xf32>
    %c0_9 = arith.constant 0 : index
    %c0_10 = arith.constant 0 : index
    %28 = vector.load %arg4[%c0_9, %c0_10] : memref<16x32xf32, #tpu.memory_space<vmem>>, vector<16x32xf32>
    %cst_11 = arith.constant dense<0.000000e+00> : vector<16x128xf32>
    %29 = tpu.matmul %28, %27, %cst_11 {dimension_numbers = #tpu.dot_dimension_numbers<[1], [1], [0], [0], [0, 0, 1, 0], [], []>} : vector<16x32xf32>, vector<128x32xf32>, vector<16x128xf32> -> vector<16x128xf32>
    %c0_12 = arith.constant 0 : index
    %c0_13 = arith.constant 0 : index
    %30 = vector.load %arg5[%c0_12, %c0_13] : memref<16x1xf32, #tpu.memory_space<vmem>>, vector<16x1xf32>
    %31 = vector.broadcast %30 : vector<16x1xf32> to vector<16x128xf32>
    %32 = arith.addf %29, %31 : vector<16x128xf32>
    %c0_14 = arith.constant 0 : index
    %c0_15 = arith.constant 0 : index
    %c0_16 = arith.constant 0 : index
    %33 = vector.load %arg6[%c0_14, %c0_15, %c0_16] : memref<1x16x128xf32, #tpu.memory_space<vmem>>, vector<1x16x128xf32>
    %34 = vector.shape_cast %33 : vector<1x16x128xf32> to vector<16x128xf32>
    %35 = vector.shape_cast %32 : vector<16x128xf32> to vector<1x16x128xf32>
    tpu.vector_store %arg6[%c0_14, %c0_15, %c0_16], %35 {strides = array<i32>} : memref<1x16x128xf32, #tpu.memory_space<vmem>>, vector<1x16x128xf32>,
    return
  }
  func.func @transform_0(%arg0: i32, %arg1: i32) -> (i32, i32, i32) {
    %c0_i32 = arith.constant 0 : i32
    %c0_i32_0 = arith.constant 0 : i32
    %c0_i32_1 = arith.constant 0 : i32
    return %arg0, %c0_i32, %c0_i32_0 : i32, i32, i32
  }
  func.func @transform_1(%arg0: i32, %arg1: i32) -> (i32, i32, i32) {
    %c0_i32 = arith.constant 0 : i32
    %c0_i32_0 = arith.constant 0 : i32
    return %arg0, %arg1, %c0_i32 : i32, i32, i32
  }
  func.func @transform_2(%arg0: i32, %arg1: i32) -> (i32, i32) {
    %c0_i32 = arith.constant 0 : i32
    %c0_i32_0 = arith.constant 0 : i32
    %c0_i32_1 = arith.constant 0 : i32
    return %c0_i32, %c0_i32_0 : i32, i32
  }
  func.func @transform_3(%arg0: i32, %arg1: i32) -> (i32, i32) {
    %c0_i32 = arith.constant 0 : i32
    %c0_i32_0 = arith.constant 0 : i32
    %c0_i32_1 = arith.constant 0 : i32
    return %c0_i32, %c0_i32_0 : i32, i32
  }
  func.func @transform_4(%arg0: i32, %arg1: i32) -> (i32, i32, i32) {
    %c0_i32 = arith.constant 0 : i32
    %c0_i32_0 = arith.constant 0 : i32
    return %arg0, %c0_i32, %arg1 : i32, i32, i32
  }
}

</mosaic_0001>

<bundles_post_ra>
// kernel: tpu_custom_call.1
= control target key start
LH: loop header
LB: loop body
LE: loop exit
PB: predicated region body
PF: predicated region fallthrough
CT: control target
= control target key end

     0   :  { %9 = vsyncpa [#allocation3], 0  ;;  %s1496_s0 = inlined_call_operand.vmem [shape: f32[2,2,32], index: 0, kind: input, shape index: {}]   ;;  %s1497_s1 = inlined_call_operand.vmem [shape: f32[2,128,32], index: 1, kind: input, shape index: {}]   ;;  %s1498_s2 = inlined_call_operand.vmem [shape: f32[16,32], index: 2, kind: input, shape index: {}]   ;;  %s1499_s3 = inlined_call_operand.vmem [shape: f32[16,1], index: 3, kind: input, shape index: {}]   ;;  %s1500_s4 = inlined_call_operand.hbm [shape: f32[2,16,128], index: 4, kind: output, shape index: {}]  }
   0x1   :  { %11 = vsyncpa [#allocation3 + $0x1], 0  ;;  %s1077_s15 = smov 0   ;;  %s1079_s16 = smov 0  }
   0x2   :  { %s1081_s17 = smov 0   ;;  %s1083_s18 = smov 0  }
   0x3   :  { %s1085_s19 = smov 0   ;;  %s1087_s20 = smov 0  }
   0x4 LB: > { %s791_s21 = sadd.s32 4294967295, %s1046_s20   ;;  %s792_s22 = sadd.s32 4294967294, %s1046_s20   ;;  %s1046_s20 = sphi %s1087_s20, %s17_s20   ;;  %s1042_s19 = sphi %s1085_s19, %s1507_s19   ;;  %s1038_s18 = sphi %s1083_s18, %s1506_s18   ;;  %s1034_s17 = sphi %s1081_s17, %s1505_s17   ;;  %s1030_s16 = sphi %s1079_s16, %s1504_s16   ;;  %s1026_s15 = sphi %s1077_s15, %s1503_s15  }
   0x5   : > { %s29_s23 = sadd.s32 1, %s1042_s19  ;;  %s134_s24 = sadd.s32 1, %s1034_s17 }
   0x6   : > { %p31_p0 = scmp.ge.s32.totalorder %s29_s23, 2  ;;  %p144_p1 = scmp.ne.s32.totalorder %s1034_s17, %s1030_s16 }
   0x7   : > { %p145_p2 = scmp.eq.s32.totalorder %s791_s21, 1  ;;  %p150_p3 = scmp.ne.s32.totalorder %s1030_s16, %s1026_s15 }
   0x8   : > { %s1509_s23 = smov (%p31_p0, %s29_s23), 0  ;;  %p151_p5 = scmp.eq.s32.totalorder %s792_s22, 1 }
   0x9   : > { %p1117_p4 = por %p145_p2, %p144_p1  ;;  %s129_s26 = ssub.s32 %s1042_s19, %s1509_s23 }
   0xa   : > { %p795_p6 = scmp.ge.s32.totalorder %s1046_s20, 1  ;;  %p132_p7 = scmp.eq.s32.totalorder %s129_s26, 0 }
   0xb   : > { %p1124_p8 = por %p151_p5, %p150_p3  ;;  %p195_p9 = scmp.lt.s32.totalorder %s1046_s20, 3 }
   0xc   : > { %s1130_s28 = scalar_select %p132_p7, %s1034_s17, %s134_s24  }
   0xd   : > { %p196_p10 = pnand %p795_p6, %p195_p9 }
   0xe   : > { %p229_p11 = scmp.lt.s32.totalorder (!%p196_p10), %s1038_s18, 1  ;;  %s824_s8 = sshll.u32 (!%p196_p10), %s1038_s18, 8 }
   0xf   : > { %199 = sbr.rel (%p196_p10) target bundleno = 469 (0x1d5), region = 36  ;;  %s1449_s11 = scalar_lea.hbm (!%p196_p10), %s1500_s4, %s824_s8 }
  0x10   : > { %s1049_s13 = smov (!%p196_p10), [#allocation2]  }
  0x14   : > { %s1134_s29 = scalar_select %p229_p11, %s1038_s18, 1  ;;  %vm260_vm0 = vcmask 261120  }
  0x16   : > { %s823_s30 = sshll.u32 %s1134_s29, 7  ;;  %s797_s14 = sshll.u32 %s1134_s29, 1 }
  0x17   : > { %s1140_s7 = scalar_lea.vmem %s1497_s1, %s823_s30  ;;  %s232_s24 = scalar_lea.vmem %s1496_s0, %s797_s14 }
  0x18   : > { %v1143_v0 = vld [vmem:[%s1140_s7 + $0x78] sm:$0xff]  ;;  %v1146_v1 = vld [vmem:[%s1140_s7 + $0x70] sm:$0xff]  ;;  %v1153_v4 = vld [vmem:[%s1140_s7 + $0x68] sm:$0xff]  ;;  %s226_s30 = sand.u32 1, %s1030_s16   ;;  %s974_s14 = sshll.u32 %s1049_s13, 4  ;;  %s975_s14 = int_to_ptr.vmem [resolvable:$false] %s974_s14 }
  0x19   : > { %v306_v2 = vsel %vm260_vm0, %v1143_v0, 0.0  ;;  %v303_v3 = vsel %vm260_vm0, %v1146_v1, 0.0  ;;  %v340_v5 = vmul.f32 %v1143_v0, %v1143_v0  ;;  %v339_v6 = vmul.f32 %v1146_v1, %v1146_v1  ;;  %v1164_v10 = vld [vmem:[%s1140_s7 + $0x60] sm:$0xff]  ;;  %v1172_v14 = vld [vmem:[%s1140_s7 + $0x58] sm:$0xff]  ;;  %v1180_v18 = vld [vmem:[%s1140_s7 + $0x50] sm:$0xff]  ;;  %s796_s5 = sshll.u32 %s226_s30, 4 }
  0x1a   : > { %307 = vadd.xlane.f32.xlu0 %v306_v2  ;;  %304 = vadd.xlane.f32.xlu1 %v303_v3  ;;  %v338_v7 = vmul.f32 %v1153_v4, %v1153_v4  ;;  %v300_v11 = vsel %vm260_vm0, %v1153_v4, 0.0  ;;  %v337_v13 = vmul.f32 %v1164_v10, %v1164_v10  ;;  %v297_v15 = vsel %vm260_vm0, %v1164_v10, 0.0  ;;  %v1188_v22 = vld [vmem:[%s1140_s7 + $0x48] sm:$0xff]  ;;  %v1196_v26 = vld [vmem:[%s1140_s7 + $0x40] sm:$0xff]  ;;  %v1204_v30 = vld [vmem:[%s1140_s7 + $0x38] sm:$0xff]  ;;  %s228_s6 = scalar_lea.vmem [#allocation2], %s796_s5 }
  0x1b   : > { %v386_v8 = vsel %vm260_vm0, %v340_v5, 0.0  ;;  %v383_v9 = vsel %vm260_vm0, %v339_v6, 0.0  ;;  %v336_v17 = vmul.f32 %v1172_v14, %v1172_v14  ;;  %v294_v19 = vsel %vm260_vm0, %v1172_v14, 0.0  ;;  %v1212_v34 = vld [vmem:[%s1140_s7 + $0x30] sm:$0xff]  ;;  %v1220_v38 = vld [vmem:[%s1140_s7 + $0x28] sm:$0xff]  ;;  %v1228_v42 = vld [vmem:[%s1140_s7 + $0x20] sm:$0xff] }
  0x1c   : > { %v380_v12 = vsel %vm260_vm0, %v338_v7, 0.0  ;;  %v377_v16 = vsel %vm260_vm0, %v337_v13, 0.0  ;;  %v335_v21 = vmul.f32 %v1180_v18, %v1180_v18  ;;  %v291_v23 = vsel %vm260_vm0, %v1180_v18, 0.0  ;;  %v1236_v46 = vld [vmem:[%s1140_s7 + $0x18] sm:$0xff]  ;;  %v1244_v50 = vld [vmem:[%s1140_s7 + $0x10] sm:$0xff]  ;;  %v1252_v54 = vld [vmem:[%s1140_s7 + $0x8] sm:$0xff] }
  0x1d   : > { %v374_v20 = vsel %vm260_vm0, %v336_v17, 0.0  ;;  %v334_v25 = vmul.f32 %v1188_v22, %v1188_v22  ;;  %v288_v27 = vsel %vm260_vm0, %v1188_v22, 0.0  ;;  %v333_v29 = vmul.f32 %v1196_v26, %v1196_v26  ;;  %v1260_v58 = vld [vmem:[%s1140_s7] sm:$0xff]  ;;  %v544_v3 = vld [vmem:[%s1499_s3 + $0x8] sm:$0xff]  ;;  %s701_s7 = sshll.u32 %s228_s6, 4  ;;  %s1451_s12 = scalar_lea.sflag [#allocation3], %s226_s30  ;;  %s1444_s7 = int_to_ptr.vmem [resolvable:$true] %s701_s7 }
  0x1e   : > { %387 = vadd.xlane.f32.xlu0 %v386_v8  ;;  %384 = vadd.xlane.f32.xlu1 %v383_v9  ;;  %v371_v24 = vsel %vm260_vm0, %v335_v21, 0.0  ;;  %v285_v31 = vsel %vm260_vm0, %v1196_v26, 0.0  ;;  %v332_v33 = vmul.f32 %v1204_v30, %v1204_v30  ;;  %v282_v35 = vsel %vm260_vm0, %v1204_v30, 0.0  ;;  %v541_v2 = vld [vmem:[%s1498_s2] sm:$0xff]  ;;  %s970_s18 = scalar_lea.vmem %s1444_s7, 256  ;;  %s976_s21 = scalar_lea.vmem %s975_s14, 512 }
  0x1f   : > { %v368_v28 = vsel %vm260_vm0, %v334_v25, 0.0  ;;  %v365_v32 = vsel %vm260_vm0, %v333_v29, 0.0  ;;  %v331_v37 = vmul.f32 %v1212_v34, %v1212_v34  ;;  %v279_v39 = vsel %vm260_vm0, %v1212_v34, 0.0  ;;  %875 = vmatprep.mubr.msk.f32.mxu0 %vm260_vm0, %v541_v2  ;;  %v543_v5 = vld [vmem:[%s1499_s3] sm:$0xff]  ;;  %p971_p12 = scmp.ne.s32.totalorder %s1444_s7, %s970_s18  ;;  %p977_p1 = scmp.lt.s32.totalorder %s1444_s7, %s975_s14 }
  0x20   : > { %v362_v36 = vsel %vm260_vm0, %v332_v33, 0.0  ;;  %v330_v41 = vmul.f32 %v1220_v38, %v1220_v38  ;;  %v276_v43 = vsel %vm260_vm0, %v1220_v38, 0.0  ;;  %v329_v45 = vmul.f32 %v1228_v42, %v1228_v42  ;;  %p978_p2 = scmp.lt.s32.totalorder %s976_s21, %s970_s18 }
  0x21   : > { %v359_v40 = vsel %vm260_vm0, %v331_v37, 0.0  ;;  %v273_v47 = vsel %vm260_vm0, %v1228_v42, 0.0  ;;  %v328_v49 = vmul.f32 %v1236_v46, %v1236_v46  ;;  %v270_v51 = vsel %vm260_vm0, %v1236_v46, 0.0  ;;  %p972_p13 = pnand %p971_p12, %p1117_p4 }
  0x22   : > { %301 = vadd.xlane.f32.xlu0 %v300_v11  ;;  %381 = vadd.xlane.f32.xlu1 %v380_v12  ;;  %v356_v44 = vsel %vm260_vm0, %v330_v41, 0.0  ;;  %v353_v48 = vsel %vm260_vm0, %v329_v45, 0.0  ;;  %v327_v53 = vmul.f32 %v1244_v50, %v1244_v50  ;;  %v267_v55 = vsel %vm260_vm0, %v1244_v50, 0.0  ;;  %p979_p3 = por %p978_p2, %p977_p1 }
  0x23   : > { %v350_v52 = vsel %vm260_vm0, %v328_v49, 0.0  ;;  %v326_v57 = vmul.f32 %v1252_v54, %v1252_v54  ;;  %v264_v59 = vsel %vm260_vm0, %v1252_v54, 0.0  ;;  %v325_v61 = vmul.f32 %v1260_v58, %v1260_v58  ;;  %p973_p0 = pneg %p972_p13 }
  0x24   : > { %v347_v56 = vsel %vm260_vm0, %v327_v53, 0.0  ;;  %v261_v62 = vsel %vm260_vm0, %v1260_v58, 0.0  ;;  %v1048_v6 = vmov 0  }
  0x25   : > { %v344_v60 = vsel %vm260_vm0, %v326_v57, 0.0  ;;  %v341_v63 = vsel %vm260_vm0, %v325_v61, 0.0  ;;  %937 = vset.pattern.permute.xlu1 %v1048_v6  ;;  %936 = vset.pattern.permute.xlu0 %v1048_v6  ;;  %p980_p5 = pnand %p979_p3, %p973_p0 }
  0x26   : > { %298 = vadd.xlane.f32.xlu0 %v297_v15  ;;  %378 = vadd.xlane.f32.xlu1 %v377_v16 }
  0x2a   : > { %295 = vadd.xlane.f32.xlu0 %v294_v19  ;;  %375 = vadd.xlane.f32.xlu1 %v374_v20 }
  0x2e   : > { %292 = vadd.xlane.f32.xlu0 %v291_v23  ;;  %372 = vadd.xlane.f32.xlu1 %v371_v24 }
  0x32   : > { %289 = vadd.xlane.f32.xlu0 %v288_v27  ;;  %369 = vadd.xlane.f32.xlu1 %v368_v28 }
  0x36   : > { %286 = vadd.xlane.f32.xlu0 %v285_v31  ;;  %366 = vadd.xlane.f32.xlu1 %v365_v32  ;;  %v485_v31 = vlaneseq }
  0x3a   : > { %283 = vadd.xlane.f32.xlu0 %v282_v35  ;;  %363 = vadd.xlane.f32.xlu1 %v362_v36 }
  0x3e   : > { %280 = vadd.xlane.f32.xlu0 %v279_v39  ;;  %360 = vadd.xlane.f32.xlu1 %v359_v40  ;;  %v486_v40 = vshrl.u32 %v485_v31, 7 }
  0x42   : > { %277 = vadd.xlane.f32.xlu0 %v276_v43  ;;  %357 = vadd.xlane.f32.xlu1 %v356_v44 }
  0x46   : > { %274 = vadd.xlane.f32.xlu0 %v273_v47  ;;  %354 = vadd.xlane.f32.xlu1 %v353_v48 }
  0x4a   : > { %271 = vadd.xlane.f32.xlu0 %v270_v51  ;;  %351 = vadd.xlane.f32.xlu1 %v350_v52  ;;  %v487_v51 = vsub.s32 1, %v486_v40  ;;  %v259_v52 = vld [vmem:[%s232_s24] sm:$0x3] }
  0x4e   : > { %268 = vadd.xlane.f32.xlu0 %v267_v55  ;;  %348 = vadd.xlane.f32.xlu1 %v347_v56  ;;  %v523_v56 = vsub.s32 0, %v486_v40 }
  0x50   : > { %v1310_v6 = vrot.slane %v259_v52, %v523_v56 }
  0x52   : > { %265 = vadd.xlane.f32.xlu0 %v264_v59  ;;  %345 = vadd.xlane.f32.xlu1 %v344_v60 }
  0x56   : > { %262 = vadd.xlane.f32.xlu0 %v261_v62  ;;  %342 = vadd.xlane.f32.xlu1 %v341_v63  ;;  %v1306_v63 = vrot.slane %v259_v52, %v487_v51 }
  0x67   : > { %552 = vperm.xlu1 %937, %v544_v3  }
  0x6c   : > { %547 = vperm.xlu0 %936, %v543_v5  }
  0xa3   : > { %v308_v7 = vpop.xlane.xlu0 %307  ;;  %v305_v8 = vpop.xlane.xlu1 %304 }
  0xa4   : > { %v1280_v9 = vmul.f32 0.03125, %v308_v7  ;;  %v1282_v11 = vmul.f32 0.03125, %v305_v8 }
  0xa6   : > { %v419_v12 = vmul.f32 %v1282_v11, %v1282_v11  ;;  %v420_v16 = vmul.f32 %v1280_v9, %v1280_v9 }
  0xa7   : > { %v388_v13 = vpop.xlane.xlu0 %387  ;;  %v385_v15 = vpop.xlane.xlu1 %384 }
  0xa8   : > { %v404_v17 = vmul.f32 0.03125, %v388_v13  ;;  %v403_v19 = vmul.f32 0.03125, %v385_v15 }
  0xaa   : > { %v436_v20 = vsub.f32 %v404_v17, %v420_v16  ;;  %v435_v21 = vsub.f32 %v403_v19, %v419_v12  ;;  %v484_v17 = vsub.f32 %v1143_v0, %v1280_v9  ;;  %v483_v19 = vsub.f32 %v1146_v1, %v1282_v11 }
  0xab   : > { %v302_v23 = vpop.xlane.xlu0 %301  ;;  %v382_v24 = vpop.xlane.xlu1 %381 }
  0xac   : > { %v452_v25 = vadd.f32 1e-06, %v436_v20  ;;  %v451_v27 = vadd.f32 1e-06, %v435_v21  ;;  %v1288_v28 = vmul.f32 0.03125, %v302_v23  ;;  %v402_v29 = vmul.f32 0.03125, %v382_v24 }
  0xae   : > { %938 = vrsqrt.f32 %v452_v25  ;;  %v418_v32 = vmul.f32 %v1288_v28, %v1288_v28 }
  0xaf   : > { %940 = vrsqrt.f32 %v451_v27  ;;  %v299_v33 = vpop.xlane.xlu0 %298  ;;  %v379_v35 = vpop.xlane.xlu1 %378 }
  0xb0   : > { %v434_v36 = vsub.f32 %v402_v29, %v418_v32  ;;  %v1293_v37 = vmul.f32 0.03125, %v299_v33  ;;  %v401_v39 = vmul.f32 0.03125, %v379_v35 }
  0xb2   : > { %v450_v41 = vadd.f32 1e-06, %v434_v36  ;;  %v417_v43 = vmul.f32 %v1293_v37, %v1293_v37 }
  0xb3   : > { %v296_v44 = vpop.xlane.xlu0 %295  ;;  %v376_v45 = vpop.xlane.xlu1 %375 }
  0xb4   : > { %942 = vrsqrt.f32 %v450_v41  ;;  %v433_v47 = vsub.f32 %v401_v39, %v417_v43  ;;  %v1300_v48 = vmul.f32 0.03125, %v296_v44  ;;  %v400_v49 = vmul.f32 0.03125, %v376_v45 }
  0xb5   : > { %v482_v39 = vsub.f32 %v1153_v4, %v1288_v28 }
  0xb6   : > { %v449_v53 = vadd.f32 1e-06, %v433_v47  ;;  %v416_v55 = vmul.f32 %v1300_v48, %v1300_v48 }
  0xb7   : > { %v293_v57 = vpop.xlane.xlu0 %292  ;;  %v373_v59 = vpop.xlane.xlu1 %372 }
  0xb8   : > { %944 = vrsqrt.f32 %v449_v53  ;;  %v432_v60 = vsub.f32 %v400_v49, %v416_v55  ;;  %v1304_v61 = vmul.f32 0.03125, %v293_v57  ;;  %v399_v62 = vmul.f32 0.03125, %v373_v59 }
  0xb9   : > { %v481_v53 = vsub.f32 %v1164_v10, %v1293_v37  ;;  %v480_v37 = vsub.f32 %v1172_v14, %v1300_v48 }
  0xba   : > { %v448_v2 = vadd.f32 1e-06, %v432_v60  ;;  %v415_v3 = vmul.f32 %v1304_v61, %v1304_v61  ;;  %v479_v48 = vsub.f32 %v1180_v18, %v1304_v61 }
  0xbb   : > { %v939_v5 = vpop.eup %938  ;;  %v290_v7 = vpop.xlane.xlu0 %289 }
  0xbc   : > { %v370_v8 = vpop.xlane.xlu1 %369  ;;  %v941_v12 = vpop.eup %940  ;;  %946 = vrsqrt.f32 %v448_v2  ;;  %v431_v13 = vsub.f32 %v399_v62, %v415_v3  ;;  %v1312_v15 = vmul.f32 0.03125, %v290_v7  ;;  %v504_v20 = vmul.f32 %v939_v5, %v1306_v63 }
  0xbd   : > { %v398_v16 = vmul.f32 0.03125, %v370_v8  ;;  %v503_v21 = vmul.f32 %v941_v12, %v1306_v63 }
  0xbe   : > { %v447_v23 = vadd.f32 1e-06, %v431_v13  ;;  %v414_v24 = vmul.f32 %v1312_v15, %v1312_v15  ;;  %v520_v29 = vmul.f32 %v504_v20, %v484_v17  ;;  %v478_v61 = vsub.f32 %v1188_v22, %v1312_v15 }
  0xbf   : > { %v287_v25 = vpop.xlane.xlu0 %286  ;;  %v519_v31 = vmul.f32 %v503_v21, %v483_v19 }
  0xc0   : > { %v367_v27 = vpop.xlane.xlu1 %366  ;;  %948 = vrsqrt.f32 %v447_v23  ;;  %v430_v32 = vsub.f32 %v398_v16, %v414_v24  ;;  %v1322_v33 = vmul.f32 0.03125, %v287_v25  ;;  %v540_v1 = vadd.f32 %v1310_v6, %v520_v29 }
  0xc1   : > { %v397_v0 = vmul.f32 0.03125, %v367_v27  ;;  %v943_v9 = vpop.eup %942  ;;  %v539_v41 = vadd.f32 %v1310_v6, %v519_v31 }
  0xc2   : > { %v446_v11 = vadd.f32 1e-06, %v430_v32  ;;  %v413_v35 = vmul.f32 %v1322_v33, %v1322_v33  ;;  %v502_v36 = vmul.f32 %v943_v9, %v1306_v63  ;;  %843 = vmatprep.subr.msk.mxu0 %vm260_vm0, %v540_v1  ;;  %v477_v15 = vsub.f32 %v1196_v26, %v1322_v33 }
  0xc3   : > { %v284_v40 = vpop.xlane.xlu0 %283  ;;  %844 = vmatpush3.xpose.msk.msra.mxu0 %vm260_vm0, %v540_v1 }
  0xc4   : > { %v364_v43 = vpop.xlane.xlu1 %363  ;;  %950 = vrsqrt.f32 %v446_v11  ;;  %v429_v44 = vsub.f32 %v397_v0, %v413_v35  ;;  %v1332_v45 = vmul.f32 0.03125, %v284_v40  ;;  %845 = vmatprep.subr.msk.mxu0 %vm260_vm0, %v539_v41  ;;  %v518_v51 = vmul.f32 %v502_v36, %v482_v39 }
  0xc5   : > { %v396_v47 = vmul.f32 0.03125, %v364_v43  ;;  %v945_v49 = vpop.eup %944 }
  0xc6   : > { %v445_v52 = vadd.f32 1e-06, %v429_v44  ;;  %v412_v4 = vmul.f32 %v1332_v45, %v1332_v45  ;;  %v501_v28 = vmul.f32 %v945_v49, %v1306_v63  ;;  %v538_v56 = vadd.f32 %v1310_v6, %v518_v51 }
  0xc7   : > { %v281_v55 = vpop.xlane.xlu0 %280  ;;  %846 = vmatpush3.xpose.msk.msra.mxu0 %vm260_vm0, %v539_v41  ;;  %v476_v33 = vsub.f32 %v1204_v30, %v1332_v45 }
  0xc8   : > { %v361_v57 = vpop.xlane.xlu1 %360  ;;  %952 = vrsqrt.f32 %v445_v52  ;;  %v428_v59 = vsub.f32 %v396_v47, %v412_v4  ;;  %v1342_v60 = vmul.f32 0.03125, %v281_v55  ;;  %847 = vmatprep.subr.msk.mxu0 %vm260_vm0, %v538_v56  ;;  %v517_v3 = vmul.f32 %v501_v28, %v481_v53 }
  0xc9   : > { %v395_v62 = vmul.f32 0.03125, %v361_v57  ;;  %v947_v2 = vpop.eup %946 }
  0xca   : > { %v444_v5 = vadd.f32 1e-06, %v428_v59  ;;  %v411_v7 = vmul.f32 %v1342_v60, %v1342_v60  ;;  %v500_v10 = vmul.f32 %v947_v2, %v1306_v63  ;;  %v537_v12 = vadd.f32 %v1310_v6, %v517_v3 }
  0xcb   : > { %v278_v8 = vpop.xlane.xlu0 %277  ;;  %848 = vmatpush3.xpose.msk.msra.mxu0 %vm260_vm0, %v538_v56  ;;  %v475_v30 = vsub.f32 %v1212_v34, %v1342_v60 }
  0xcc   : > { %v358_v13 = vpop.xlane.xlu1 %357  ;;  %954 = vrsqrt.f32 %v444_v5  ;;  %v427_v16 = vsub.f32 %v395_v62, %v411_v7  ;;  %v1352_v17 = vmul.f32 0.03125, %v278_v8  ;;  %849 = vmatprep.subr.msk.mxu0 %vm260_vm0, %v537_v12  ;;  %v516_v21 = vmul.f32 %v500_v10, %v480_v37 }
  0xcd   : > { %v394_v19 = vmul.f32 0.03125, %v358_v13  ;;  %v949_v20 = vpop.eup %948 }
  0xce   : > { %v443_v23 = vadd.f32 1e-06, %v427_v16  ;;  %v410_v24 = vmul.f32 %v1352_v17, %v1352_v17  ;;  %v499_v14 = vmul.f32 %v949_v20, %v1306_v63  ;;  %v536_v27 = vadd.f32 %v1310_v6, %v516_v21 }
  0xcf   : > { %v275_v25 = vpop.xlane.xlu0 %274  ;;  %850 = vmatpush3.xpose.msk.msra.mxu0 %vm260_vm0, %v537_v12 }
  0xd0   : > { %v355_v29 = vpop.xlane.xlu1 %354  ;;  %956 = vrsqrt.f32 %v443_v23  ;;  %v426_v31 = vsub.f32 %v394_v19, %v410_v24  ;;  %v1362_v32 = vmul.f32 0.03125, %v275_v25  ;;  %851 = vmatprep.subr.msk.mxu0 %vm260_vm0, %v536_v27  ;;  %v515_v1 = vmul.f32 %v499_v14, %v479_v48 }
  0xd1   : > { %v393_v0 = vmul.f32 0.03125, %v355_v29  ;;  %v951_v9 = vpop.eup %950 }
  0xd2   : > { %v442_v11 = vadd.f32 1e-06, %v426_v31  ;;  %v409_v35 = vmul.f32 %v1362_v32, %v1362_v32  ;;  %v498_v18 = vmul.f32 %v951_v9, %v1306_v63  ;;  %v535_v39 = vadd.f32 %v1310_v6, %v515_v1 }
  0xd3   : > { %v272_v36 = vpop.xlane.xlu0 %271  ;;  %852 = vmatpush3.xpose.msk.msra.mxu0 %vm260_vm0, %v536_v27  ;;  %v474_v31 = vsub.f32 %v1220_v38, %v1352_v17 }
  0xd4   : > { %v352_v40 = vpop.xlane.xlu1 %351  ;;  %958 = vrsqrt.f32 %v442_v11  ;;  %v425_v41 = vsub.f32 %v393_v0, %v409_v35  ;;  %v1372_v43 = vmul.f32 0.03125, %v272_v36  ;;  %853 = vmatprep.subr.msk.mxu0 %vm260_vm0, %v535_v39  ;;  %v514_v49 = vmul.f32 %v498_v18, %v478_v61 }
  0xd5   : > { %v392_v44 = vmul.f32 0.03125, %v352_v40  ;;  %v953_v47 = vpop.eup %952  ;;  %v473_v18 = vsub.f32 %v1228_v42, %v1362_v32 }
  0xd6   : > { %v441_v51 = vadd.f32 1e-06, %v425_v41  ;;  %v408_v52 = vmul.f32 %v1372_v43, %v1372_v43  ;;  %v497_v22 = vmul.f32 %v953_v47, %v1306_v63  ;;  %v534_v28 = vadd.f32 %v1310_v6, %v514_v49 }
  0xd7   : > { %v269_v4 = vpop.xlane.xlu0 %268  ;;  %854 = vmatpush3.xpose.msk.msra.mxu0 %vm260_vm0, %v535_v39  ;;  %v472_v40 = vsub.f32 %v1236_v46, %v1372_v43 }
  0xd8   : > { %v349_v53 = vpop.xlane.xlu1 %348  ;;  %960 = vrsqrt.f32 %v441_v51  ;;  %v424_v55 = vsub.f32 %v392_v44, %v408_v52  ;;  %v1382_v56 = vmul.f32 0.03125, %v269_v4  ;;  %855 = vmatprep.subr.msk.mxu0 %vm260_vm0, %v534_v28  ;;  %v513_v62 = vmul.f32 %v497_v22, %v477_v15 }
  0xd9   : > { %v391_v57 = vmul.f32 0.03125, %v349_v53  ;;  %v955_v59 = vpop.eup %954 }
  0xda   : > { %v440_v2 = vadd.f32 1e-06, %v424_v55  ;;  %v407_v3 = vmul.f32 %v1382_v56, %v1382_v56  ;;  %v496_v26 = vmul.f32 %v955_v59, %v1306_v63  ;;  %v533_v7 = vadd.f32 %v1310_v6, %v513_v62 }
  0xdb   : > { %v266_v5 = vpop.xlane.xlu0 %265  ;;  %856 = vmatpush3.xpose.msk.msra.mxu0 %vm260_vm0, %v534_v28  ;;  %v471_v47 = vsub.f32 %v1244_v50, %v1382_v56 }
  0xdc   : > { %v346_v10 = vpop.xlane.xlu1 %345  ;;  %962 = vrsqrt.f32 %v440_v2  ;;  %v423_v37 = vsub.f32 %v391_v57, %v407_v3  ;;  %v310_v8 = vmul.f32 0.03125, %v266_v5  ;;  %857 = vmatprep.subr.msk.mxu0 %vm260_vm0, %v533_v7  ;;  %v512_v16 = vmul.f32 %v496_v26, %v476_v33 }
  0xdd   : > { %v390_v12 = vmul.f32 0.03125, %v346_v10  ;;  %v957_v13 = vpop.eup %956 }
  0xde   : > { %v439_v19 = vadd.f32 1e-06, %v423_v37  ;;  %v406_v20 = vmul.f32 %v310_v8, %v310_v8  ;;  %v495_v21 = vmul.f32 %v957_v13, %v1306_v63  ;;  %v532_v23 = vadd.f32 %v1310_v6, %v512_v16 }
  0xdf   : > { %v263_v45 = vpop.xlane.xlu0 %262  ;;  %858 = vmatpush3.xpose.msk.msra.mxu0 %vm260_vm0, %v533_v7  ;;  %v470_v52 = vsub.f32 %v1252_v54, %v310_v8 }
  0xe0   : > { %v343_v24 = vpop.xlane.xlu1 %342  ;;  %964 = vrsqrt.f32 %v439_v19  ;;  %v422_v14 = vsub.f32 %v390_v12, %v406_v20  ;;  %v309_v48 = vmul.f32 0.03125, %v263_v45  ;;  %859 = vmatprep.subr.msk.mxu0 %vm260_vm0, %v532_v23  ;;  %v511_v29 = vmul.f32 %v495_v21, %v475_v30 }
  0xe1   : > { %v389_v25 = vmul.f32 0.03125, %v343_v24  ;;  %v959_v27 = vpop.eup %958 }
  0xe2   : > { %v438_v0 = vadd.f32 1e-06, %v422_v14  ;;  %v405_v9 = vmul.f32 %v309_v48, %v309_v48  ;;  %v494_v34 = vmul.f32 %v959_v27, %v1306_v63  ;;  %v531_v60 = vadd.f32 %v1310_v6, %v511_v29 }
  0xe3   : > { %860 = vmatpush3.xpose.msk.msra.mxu0 %vm260_vm0, %v532_v23  ;;  %v469_v28 = vsub.f32 %v1260_v58, %v309_v48  ;;  %v542_v58 = vld [vmem:[%s1498_s2 + $0x8] sm:$0xff] }
  0xe4   : > { %966 = vrsqrt.f32 %v438_v0  ;;  %v421_v1 = vsub.f32 %v389_v25, %v405_v9  ;;  %v510_v11 = vmul.f32 %v494_v34, %v474_v31  ;;  %861 = vmatprep.subr.msk.mxu0 %vm260_vm0, %v531_v60 }
  0xe5   : > { %v961_v35 = vpop.eup %960 }
  0xe6   : > { %v437_v61 = vadd.f32 1e-06, %v421_v1  ;;  %v530_v38 = vadd.f32 %v1310_v6, %v510_v11  ;;  %v493_v17 = vmul.f32 %v961_v35, %v1306_v63 }
  0xe7   : > { %862 = vmatpush3.xpose.msk.msra.mxu0 %vm260_vm0, %v531_v60  ;;  %v548_v57 = vpop.permute.xlu0 %547 }
  0xe8   : > { %968 = vrsqrt.f32 %v437_v61  ;;  %v509_v36 = vmul.f32 %v493_v17, %v473_v18  ;;  %863 = vmatprep.subr.msk.mxu0 %vm260_vm0, %v530_v38 }
  0xe9   : > { %v963_v39 = vpop.eup %962 }
  0xea   : > { %v529_v41 = vadd.f32 %v1310_v6, %v509_v36  ;;  %v492_v44 = vmul.f32 %v963_v39, %v1306_v63 }
  0xeb   : > { %864 = vmatpush3.xpose.msk.msra.mxu0 %vm260_vm0, %v530_v38 }
  0xec   : > { %v508_v42 = vmul.f32 %v492_v44, %v472_v40  ;;  %865 = vmatprep.subr.msk.mxu0 %vm260_vm0, %v529_v41 }
  0xed   : > { %v965_v32 = vpop.eup %964 }
  0xee   : > { %v528_v49 = vadd.f32 %v1310_v6, %v508_v42  ;;  %v491_v51 = vmul.f32 %v965_v32, %v1306_v63 }
  0xef   : > { %866 = vmatpush3.xpose.msk.msra.mxu0 %vm260_vm0, %v529_v41 }
  0xf0   : > { %v507_v46 = vmul.f32 %v491_v51, %v471_v47  ;;  %867 = vmatprep.subr.msk.mxu0 %vm260_vm0, %v528_v49 }
  0xf1   : > { %v967_v43 = vpop.eup %966 }
  0xf2   : > { %v527_v22 = vadd.f32 %v1310_v6, %v507_v46  ;;  %v490_v15 = vmul.f32 %v967_v43, %v1306_v63 }
  0xf3   : > { %868 = vmatpush3.xpose.msk.msra.mxu0 %vm260_vm0, %v528_v49 }
  0xf4   : > { %v506_v50 = vmul.f32 %v490_v15, %v470_v52  ;;  %869 = vmatprep.subr.msk.mxu0 %vm260_vm0, %v527_v22 }
  0xf5   : > { %v969_v4 = vpop.eup %968 }
  0xf6   : > { %v526_v53 = vadd.f32 %v1310_v6, %v506_v50  ;;  %v489_v55 = vmul.f32 %v969_v4, %v1306_v63  ;;  %v553_v63 = vpop.permute.xlu1 %552 }
  0xf7   : > { %870 = vmatpush3.xpose.msk.msra.mxu0 %vm260_vm0, %v527_v22 }
  0xf8   : > { %v505_v54 = vmul.f32 %v489_v55, %v469_v28  ;;  %871 = vmatprep.subr.msk.mxu0 %vm260_vm0, %v526_v53 }
  0xfa   : > { %v525_v56 = vadd.f32 %v1310_v6, %v505_v54 }
  0xfb   : > { %872 = vmatpush3.xpose.msk.msra.mxu0 %vm260_vm0, %v526_v53 }
  0xfc   : > { %873 = vmatprep.subr.msk.mxu0 %vm260_vm0, %v525_v56 }
  0xff   : > { %874 = vmatpush3.xpose.msk.msra.mxu0 %vm260_vm0, %v525_v56 }
 0x102   : > { %876 = vmatmul.mubr.msk.f32.vlgmr.msra.gmra.mxu0 %vm260_vm0, %v542_v58 }
 0x1c2   : > { %v877_v6 = vpop.f32.mrf.mxu0 }
 0x1c3   : > { %v681_v59 = vadd.f32 %v877_v6, %v553_v63 }
 0x1c4   : > { %v675_v62 = vpop.f32.mrf.mxu0 }
 0x1c5   : > { %685 = vst [vmem:[%s228_s6 + $0x8] sm:$0xff] %v681_v59  ;;  %v676_v2 = vadd.f32 %v675_v62, %v548_v57 }
 0x1c7   : > { %684 = vst [vmem:[%s228_s6] sm:$0xff] %v676_v2 }
 0x1c8   : > { %983 = shalt.err (!%p980_p5)
}
 0x1c9   : > { %s984_s22 = scalar_lea.hbm %s1449_s11, 256  ;;  %s988_s29 = scalar_lea.hbm %s1500_s4, 512 }
 0x1ca   : > { %p985_p6 = scmp.ne.s32.totalorder %s1449_s11, %s984_s22  ;;  %p989_p10 = scmp.lt.s32.totalorder %s1449_s11, %s1500_s4 }
 0x1cb   : > { %p990_p11 = scmp.lt.s32.totalorder %s988_s29, %s984_s22 }
 0x1cc   : > { %p986_p7 = pnand %p985_p6, %p1117_p4 }
 0x1cd   : > { %p991_p12 = por %p990_p11, %p989_p10 }
 0x1ce   : > { %p987_p9 = pneg %p986_p7 }
 0x1d0   : > { %p992_p13 = pnand %p991_p12, %p987_p9 }
 0x1d2   : > { %995 = shalt.err (!%p992_p13)
}
 0x1d3   : > { %s1050_s6 = smov 128   ;;  %s1051_s8 = smov 8  }
 0x1d4   : > { %878 = dma.vmem_to_hbm [thread:$0]  (%p1117_p4), %s1444_s7, 256, %s1449_s11, %s1451_s12, %s1050_s6, %s1050_s6, %s1051_s8  }
 0x1d5 PF: > { %p884_p0 = scmp.ge.s32.totalorder %s1046_s20, 2  ;;  %s716_s9 = sand.u32 1, %s1026_s15  }
 0x1d6   : > { %s717_s10 = scalar_lea.sflag [#allocation3], %s716_s9 }
 0x1d7   : > { %p881_p1 = pnand %p884_p0, %p1124_p8 }
 0x1d9   : > { %p882_p2 = pneg %p881_p1 }
 0x1db   : > { %1021 = dma.done.wait (%p882_p2), %s717_s10, 256  }
 0x1dc   : > { %1023 = vsyncadd (%p882_p2), %s717_s10, 4294967040  ;;  %s17_s20 = sadd.s32 1, %s1046_s20   ;;  %s1503_s15 = smov %s1030_s16 }
 0x1dd   : > { %p14_p3 = scmp.ge.s32.totalorder %s17_s20, 4   ;;  %s1504_s16 = smov %s1034_s17 }
 0x1de   : > { %s1505_s17 = smov %s1130_s28  ;;  %s1506_s18 = smov %s1042_s19 }
 0x1df   : > { %s1507_s19 = smov %s1509_s23  ;;  %16 = sbr.rel (!%p14_p3) target bundleno = 4 (0x4), region = 74 }
 0x1e4   :  { %722 = vsyncpa [#allocation3], 1 }
 0x1e5   :  { %724 = vsyncpa [#allocation3 + $0x1], 1 }

</bundles_post_ra>
